<compile_context>
chip_gen: v5e
topology: v5e:2x2
jax: 0.10.0
libtpu: 0.0.40
codegen_flags: <defaults>
</compile_context>

<pallas_src>
import jax
import jax.numpy as jnp
from jax.experimental import pallas as pl
from jax.experimental.pallas import tpu as pltpu


def _round_up(x, m):
    return (x + m - 1) // m * m


def _sigmoid(x):
    # logistic(x) == 0.5 * tanh(0.5 * x) + 0.5  (tanh goes to the EUP slot)
    return 0.5 * jnp.tanh(0.5 * x) + 0.5


def mlp_kernel(x_ref, w1_ref, b1_ref, w2_ref, b2_ref, o_ref):
    # linear1: [tb, D_in] @ [D_in, H] on the MXU (bf16 in, f32 accumulate)
    h = jnp.dot(x_ref[...], w1_ref[...], preferred_element_type=jnp.float32)
    h = h + b1_ref[...]
    h = _sigmoid(h)
    # linear2: [tb, H] @ [H, D_out]; cast h back to bf16 to feed the MXU
    y = jnp.dot(h.astype(jnp.bfloat16), w2_ref[...],
                preferred_element_type=jnp.float32)
    y = y + b2_ref[...]
    o_ref[...] = _sigmoid(y).astype(o_ref.dtype)


def mlp_forward(x, w1, b1, w2, b2, *, batch_tile=512):
    """sigmoid(sigmoid(x @ w1 + b1) @ w2 + b2)

    x : [B, D_in]   w1: [D_in, H]  b1: [H]   w2: [H, D_out]  b2: [D_out]
    """
    B, D_in = x.shape
    H = w1.shape[1]
    D_out = w2.shape[1]

    # Lane-dense padded feature dims (multiples of 128).
    D_in_p = _round_up(D_in, 128)
    H_p = _round_up(H, 128)
    D_out_p = _round_up(D_out, 128)

    # Batch tile: multiple of 8 sublanes, at most the (padded) batch.
    tb = min(_round_up(batch_tile, 8), _round_up(B, 8))
    B_p = _round_up(B, tb)

    # Zero-pad and cast once (one-time cost; in a real model the activation
    # would already arrive bf16 and weights would be pre-cast/padded).
    x_p = jnp.pad(x, ((0, B_p - B), (0, D_in_p - D_in))).astype(jnp.bfloat16)
    w1_p = jnp.pad(w1, ((0, D_in_p - D_in), (0, H_p - H))).astype(jnp.bfloat16)
    w2_p = jnp.pad(w2, ((0, H_p - H), (0, D_out_p - D_out))).astype(jnp.bfloat16)
    b1_p = jnp.pad(b1, (0, H_p - H)).reshape(1, H_p).astype(jnp.float32)
    b2_p = jnp.pad(b2, (0, D_out_p - D_out)).reshape(1, D_out_p).astype(jnp.float32)

    out = pl.pallas_call(
        mlp_kernel,
        out_shape=jax.ShapeDtypeStruct((B_p, D_out_p), jnp.float32),
        grid_spec=pltpu.PrefetchScalarGridSpec(
            num_scalar_prefetch=0,
            grid=(B_p // tb,),
            in_specs=[
                pl.BlockSpec((tb, D_in_p), lambda i: (i, 0)),      # x tile (pipelined)
                pl.BlockSpec((D_in_p, H_p), lambda i: (0, 0)),     # w1 (resident)
                pl.BlockSpec((1, H_p), lambda i: (0, 0)),          # b1 (resident)
                pl.BlockSpec((H_p, D_out_p), lambda i: (0, 0)),    # w2 (resident)
                pl.BlockSpec((1, D_out_p), lambda i: (0, 0)),      # b2 (resident)
            ],
            out_specs=pl.BlockSpec((tb, D_out_p), lambda i: (i, 0)),
        ),
        compiler_params=pltpu.CompilerParams(
            dimension_semantics=("parallel",),
            vmem_limit_bytes=64 * 1024 * 1024,
        ),
    )(x_p, w1_p, b1_p, w2_p, b2_p)

    # Strip batch / lane padding.
    return out[:B, :D_out]


def mlp_reference(x, w1, b1, w2, b2):
    h = jax.nn.sigmoid(x @ w1 + b1)
    return jax.nn.sigmoid(h @ w2 + b2)


if __name__ == "__main__":
    # Small shapes consistent with MLP(input_dim, hidden_dim, output_dim).
    B, D_in, H, D_out = 8, 32, 64, 16

    key = jax.random.PRNGKey(0)
    kx, kw1, kb1, kw2, kb2 = jax.random.split(key, 5)

    x = jax.random.normal(kx, (B, D_in), dtype=jnp.float32)
    lim1 = 1.0 / (D_in ** 0.5)
    w1 = jax.random.uniform(kw1, (D_in, H), jnp.float32, -lim1, lim1)
    b1 = jax.random.uniform(kb1, (H,), jnp.float32, -lim1, lim1)
    lim2 = 1.0 / (H ** 0.5)
    w2 = jax.random.uniform(kw2, (H, D_out), jnp.float32, -lim2, lim2)
    b2 = jax.random.uniform(kb2, (D_out,), jnp.float32, -lim2, lim2)

    fwd = jax.jit(mlp_forward)
    out = jax.block_until_ready(fwd(x, w1, b1, w2, b2))

    ref = mlp_reference(x, w1, b1, w2, b2)
    assert out.shape == (B, D_out)
    # bf16 MXU inputs (f32 accumulation) -> compare against f32 reference with
    # bf16-appropriate tolerance; sigmoid output is in [0, 1].
    assert jnp.allclose(out, ref, atol=2e-2, rtol=2e-2), "mismatch vs reference"

    print("KERNEL_OK")
</pallas_src>

<mosaic_0001>
module attributes {stable_mosaic.version = 11 : i64} {
  func.func @mlp_kernel(%arg0: i32, %arg1: memref<8x128xbf16, #tpu.memory_space<vmem>>, %arg2: memref<128x128xbf16, #tpu.memory_space<vmem>>, %arg3: memref<1x128xf32, #tpu.memory_space<vmem>>, %arg4: memref<128x128xbf16, #tpu.memory_space<vmem>>, %arg5: memref<1x128xf32, #tpu.memory_space<vmem>>, %arg6: memref<8x128xf32, #tpu.memory_space<vmem>>) attributes {dimension_semantics = [#tpu.dimension_semantics<parallel>], iteration_bounds = array<i64: 1>, scalar_prefetch = 0 : i64, scratch_operands = 0 : i64, tpu.core_type = #tpu.core_type<tc>, window_params = [{transform_indices = @transform_0, window_bounds = array<i64: 8, 128>}, {pipeline_mode = #tpu.pipeline_mode<synchronous>, transform_indices = @transform_1, window_bounds = array<i64: 128, 128>}, {pipeline_mode = #tpu.pipeline_mode<synchronous>, transform_indices = @transform_2, window_bounds = array<i64: 1, 128>}, {pipeline_mode = #tpu.pipeline_mode<synchronous>, transform_indices = @transform_3, window_bounds = array<i64: 128, 128>}, {pipeline_mode = #tpu.pipeline_mode<synchronous>, transform_indices = @transform_4, window_bounds = array<i64: 1, 128>}, {transform_indices = @transform_5, window_bounds = array<i64: 8, 128>}]} {
    %c0 = arith.constant 0 : index
    %c0_0 = arith.constant 0 : index
    %0 = vector.load %arg1[%c0, %c0_0] : memref<8x128xbf16, #tpu.memory_space<vmem>>, vector<8x128xbf16>
    %c0_1 = arith.constant 0 : index
    %c0_2 = arith.constant 0 : index
    %1 = vector.load %arg2[%c0_1, %c0_2] : memref<128x128xbf16, #tpu.memory_space<vmem>>, vector<128x128xbf16>
    %cst = arith.constant dense<0.000000e+00> : vector<8x128xf32>
    %2 = tpu.matmul %0, %1, %cst {dimension_numbers = #tpu.dot_dimension_numbers<[1], [0], [0], [1], [0, 0, 1, 1], [], []>} : vector<8x128xbf16>, vector<128x128xbf16>, vector<8x128xf32> -> vector<8x128xf32>
    %c0_3 = arith.constant 0 : index
    %c0_4 = arith.constant 0 : index
    %3 = vector.load %arg3[%c0_3, %c0_4] : memref<1x128xf32, #tpu.memory_space<vmem>>, vector<1x128xf32>
    %4 = vector.broadcast %3 : vector<1x128xf32> to vector<8x128xf32>
    %5 = arith.addf %2, %4 : vector<8x128xf32>
    %cst_5 = arith.constant 5.000000e-01 : f32
    %6 = vector.broadcast %cst_5 : f32 to vector<8x128xf32>
    %7 = arith.mulf %6, %5 : vector<8x128xf32>
    %8 = math.tanh %7 : vector<8x128xf32>
    %cst_6 = arith.constant 5.000000e-01 : f32
    %9 = vector.broadcast %cst_6 : f32 to vector<8x128xf32>
    %10 = arith.mulf %9, %8 : vector<8x128xf32>
    %cst_7 = arith.constant 5.000000e-01 : f32
    %11 = vector.broadcast %cst_7 : f32 to vector<8x128xf32>
    %12 = arith.addf %10, %11 : vector<8x128xf32>
    %13 = arith.truncf %12 : vector<8x128xf32> to vector<8x128xbf16>
    %c0_8 = arith.constant 0 : index
    %c0_9 = arith.constant 0 : index
    %14 = vector.load %arg4[%c0_8, %c0_9] : memref<128x128xbf16, #tpu.memory_space<vmem>>, vector<128x128xbf16>
    %cst_10 = arith.constant dense<0.000000e+00> : vector<8x128xf32>
    %15 = tpu.matmul %13, %14, %cst_10 {dimension_numbers = #tpu.dot_dimension_numbers<[1], [0], [0], [1], [0, 0, 1, 1], [], []>} : vector<8x128xbf16>, vector<128x128xbf16>, vector<8x128xf32> -> vector<8x128xf32>
    %c0_11 = arith.constant 0 : index
    %c0_12 = arith.constant 0 : index
    %16 = vector.load %arg5[%c0_11, %c0_12] : memref<1x128xf32, #tpu.memory_space<vmem>>, vector<1x128xf32>
    %17 = vector.broadcast %16 : vector<1x128xf32> to vector<8x128xf32>
    %18 = arith.addf %15, %17 : vector<8x128xf32>
    %cst_13 = arith.constant 5.000000e-01 : f32
    %19 = vector.broadcast %cst_13 : f32 to vector<8x128xf32>
    %20 = arith.mulf %19, %18 : vector<8x128xf32>
    %21 = math.tanh %20 : vector<8x128xf32>
    %cst_14 = arith.constant 5.000000e-01 : f32
    %22 = vector.broadcast %cst_14 : f32 to vector<8x128xf32>
    %23 = arith.mulf %22, %21 : vector<8x128xf32>
    %cst_15 = arith.constant 5.000000e-01 : f32
    %24 = vector.broadcast %cst_15 : f32 to vector<8x128xf32>
    %25 = arith.addf %23, %24 : vector<8x128xf32>
    %c0_16 = arith.constant 0 : index
    %c0_17 = arith.constant 0 : index
    %26 = vector.load %arg6[%c0_16, %c0_17] : memref<8x128xf32, #tpu.memory_space<vmem>>, vector<8x128xf32>
    tpu.vector_store %arg6[%c0_16, %c0_17], %25 {strides = array<i32>} : memref<8x128xf32, #tpu.memory_space<vmem>>, vector<8x128xf32>,
    return
  }
  func.func @transform_0(%arg0: i32) -> (i32, i32) {
    %c0_i32 = arith.constant 0 : i32
    %c0_i32_0 = arith.constant 0 : i32
    return %arg0, %c0_i32 : i32, i32
  }
  func.func @transform_1(%arg0: i32) -> (i32, i32) {
    %c0_i32 = arith.constant 0 : i32
    %c0_i32_0 = arith.constant 0 : i32
    %c0_i32_1 = arith.constant 0 : i32
    return %c0_i32, %c0_i32_0 : i32, i32
  }
  func.func @transform_2(%arg0: i32) -> (i32, i32) {
    %c0_i32 = arith.constant 0 : i32
    %c0_i32_0 = arith.constant 0 : i32
    %c0_i32_1 = arith.constant 0 : i32
    return %c0_i32, %c0_i32_0 : i32, i32
  }
  func.func @transform_3(%arg0: i32) -> (i32, i32) {
    %c0_i32 = arith.constant 0 : i32
    %c0_i32_0 = arith.constant 0 : i32
    %c0_i32_1 = arith.constant 0 : i32
    return %c0_i32, %c0_i32_0 : i32, i32
  }
  func.func @transform_4(%arg0: i32) -> (i32, i32) {
    %c0_i32 = arith.constant 0 : i32
    %c0_i32_0 = arith.constant 0 : i32
    %c0_i32_1 = arith.constant 0 : i32
    return %c0_i32, %c0_i32_0 : i32, i32
  }
  func.func @transform_5(%arg0: i32) -> (i32, i32) {
    %c0_i32 = arith.constant 0 : i32
    %c0_i32_0 = arith.constant 0 : i32
    return %arg0, %c0_i32 : i32, i32
  }
}

</mosaic_0001>

<bundles_post_ra>
// kernel: mlp_forward.1
= control target key start
LH: loop header
LB: loop body
LE: loop exit
PB: predicated region body
PF: predicated region fallthrough
CT: control target
= control target key end

     0   :  { %s414_s0 = inlined_call_operand.vmem [shape: bf16[8,128], index: 0, kind: input, shape index: {}]   ;;  %s415_s1 = inlined_call_operand.vmem [shape: bf16[128,128], index: 1, kind: input, shape index: {}]   ;;  %s416_s2 = inlined_call_operand.vmem [shape: f32[1,128], index: 2, kind: input, shape index: {}]   ;;  %s417_s3 = inlined_call_operand.vmem [shape: bf16[128,128], index: 3, kind: input, shape index: {}]   ;;  %s418_s4 = inlined_call_operand.vmem [shape: f32[1,128], index: 4, kind: input, shape index: {}]   ;;  %s419_s5 = inlined_call_operand.hbm [shape: f32[8,128], index: 5, kind: output, shape index: {}]  }
   0x1   :  { %v281_v0 = vld [vmem:[%s415_s1 + $0x38] sm:$0xff]  ;;  %v280_v1 = vld [vmem:[%s415_s1 + $0x30] sm:$0xff] }
   0x2   :  { %90 = vmatpush.bf16.msra.mxu0 %v281_v0  ;;  %v289_v2 = vld [vmem:[%s417_s3 + $0x38] sm:$0xff]  ;;  %v288_v3 = vld [vmem:[%s417_s3 + $0x30] sm:$0xff] }
   0x3   :  { %176 = vmatpush.bf16.msra.mxu1 %v289_v2 }
   0x4   :  { %10 = vsyncpa [#allocation3], 0  ;;  %v279_v4 = vld [vmem:[%s415_s1 + $0x28] sm:$0xff]  ;;  %v278_v6 = vld [vmem:[%s415_s1 + $0x20] sm:$0xff]  ;;  %s201_s6 = sshll.u32 %s419_s5, 4  ;;  %s202_s6 = int_to_ptr.hbm [resolvable:$true] %s201_s6 }
   0x5   :  { %v287_v5 = vld [vmem:[%s417_s3 + $0x28] sm:$0xff]  ;;  %v286_v7 = vld [vmem:[%s417_s3 + $0x20] sm:$0xff]  ;;  %v277_v8 = vld [vmem:[%s415_s1 + $0x18] sm:$0xff] }
   0x6   :  { %91 = vmatpush.bf16.msra.mxu0 %v280_v1  ;;  %v276_v9 = vld [vmem:[%s415_s1 + $0x10] sm:$0xff]  ;;  %v275_v10 = vld [vmem:[%s415_s1 + $0x8] sm:$0xff]  ;;  %v274_v11 = vld [vmem:[%s415_s1] sm:$0xff] }
   0x7   :  { %177 = vmatpush.bf16.msra.mxu1 %v288_v3  ;;  %v21_v12 = vld [vmem:[%s414_s0] sm:$0xf]  ;;  %v285_v13 = vld [vmem:[%s417_s3 + $0x18] sm:$0xff]  ;;  %v284_v14 = vld [vmem:[%s417_s3 + $0x10] sm:$0xff] }
   0x8   :  { %v283_v15 = vld [vmem:[%s417_s3 + $0x8] sm:$0xff]  ;;  %v282_v16 = vld [vmem:[%s417_s3] sm:$0xff] }
   0x9   :  { %v291_v17 = vld [vmem:[%s416_s2] ss:$0 sm:$0xff]  ;;  %s323_s2 = smov [#allocation2]  }
   0xa   :  { %92 = vmatpush.bf16.msra.mxu0 %v279_v4  ;;  %v292_v26 = vld [vmem:[%s418_s4] ss:$0 sm:$0xff]  ;;  %s199_s3 = sshll.u32 %s323_s2, 4  ;;  %s200_s3 = int_to_ptr.vmem [resolvable:$true] %s199_s3 }
   0xb   :  { %178 = vmatpush.bf16.msra.mxu1 %v287_v5 }
   0xe   :  { %93 = vmatpush.bf16.msra.mxu0 %v278_v6 }
   0xf   :  { %179 = vmatpush.bf16.msra.mxu1 %v286_v7 }
  0x12   :  { %94 = vmatpush.bf16.msra.mxu0 %v277_v8 }
  0x13   :  { %180 = vmatpush.bf16.msra.mxu1 %v285_v13 }
  0x16   :  { %95 = vmatpush.bf16.msra.mxu0 %v276_v9 }
  0x17   :  { %181 = vmatpush.bf16.msra.mxu1 %v284_v14 }
  0x1a   :  { %96 = vmatpush.bf16.msra.mxu0 %v275_v10 }
  0x1b   :  { %182 = vmatpush.bf16.msra.mxu1 %v283_v15 }
  0x1e   :  { %97 = vmatpush.bf16.msra.mxu0 %v274_v11 }
  0x1f   :  { %183 = vmatpush.bf16.msra.mxu1 %v282_v16 }
  0x21   :  { %98 = vmatmul.bf16.vlgmr.msra.gmra.mxu0 %v21_v12 }
  0x9e   :  { %v99_v18 = vpop.f32.mrf.mxu0 }
  0x9f   :  { %v100_v19 = vadd.f32 %v291_v17, %v99_v18 }
  0xa1   :  { %v103_v20 = vmul.f32 0.5, %v100_v19 }
  0xa3   :  { %293 = vtanh.f32 %v103_v20 }
  0xa6   :  { %v101_v21 = vpop.f32.mrf.mxu0 }
  0xa9   :  { %v294_v22 = vpop.eup %293 }
  0xaa   :  { %v105_v23 = vmul.f32 0.5, %v294_v22 }
  0xac   :  { %v106_v24 = vadd.f32 0.5, %v105_v23 }
  0xae   :  { %v107_v25 = vpack.c.bf16 %v106_v24, %v106_v24 }
  0xb0   :  { %184 = vmatmul.bf16.vlgmr.msra.gmra.mxu1 %v107_v25 }
 0x12d   :  { %v185_v27 = vpop.f32.mrf.mxu1 }
 0x12e   :  { %v186_v28 = vadd.f32 %v292_v26, %v185_v27 }
 0x130   :  { %v189_v29 = vmul.f32 0.5, %v186_v28 }
 0x132   :  { %295 = vtanh.f32 %v189_v29 }
 0x135   :  { %v187_v30 = vpop.f32.mrf.mxu1 }
 0x138   :  { %v296_v31 = vpop.eup %295 }
 0x139   :  { %v191_v32 = vmul.f32 0.5, %v296_v31 }
 0x13b   :  { %v192_v33 = vadd.f32 0.5, %v191_v32 }
 0x13d   :  { %193 = vst [vmem:[#allocation2] sm:$0xff] %v192_v33 }
 0x13e   :  { %204 = dma.vmem_to_hbm [thread:$0]  %s200_s3, 128, %s202_s6, [#allocation3]  }
 0x13f   :  { %321 = dma.done.wait [#allocation3], 128  }
 0x140   :  { %322 = vsyncadd [#allocation3], 4294967168 }
 0x141   :  { %209 = vsyncpa [#allocation3], 1 }

</bundles_post_ra>
